<compile_context>
chip_gen: v6e
topology: v6e:2x2x1
jax: 0.10.0
libtpu: 0.0.40
codegen_flags: <defaults>
</compile_context>

<pallas_src>
import math
from typing import Optional

import jax
import jax.numpy as jnp
from jax.experimental import pallas as pl
from jax.experimental.pallas import tpu as pltpu

_MIB = 1024 * 1024


def _gelu_tanh(x):
    # BERT-style tanh approximation of GELU (tanh lowers to the EUP).
    c = math.sqrt(2.0 / math.pi)
    return 0.5 * x * (1.0 + jnp.tanh(c * (x + 0.044715 * x * x * x)))


def _adapter_kernel(x_ref, wd_ref, bd_ref, wu_ref, bu_ref, o_ref):
    # x_ref:  (tm, D)   activation row tile (native dtype)
    # wd_ref: (D, Bp)   down-proj weight, (in, out) layout, Bp = pad128(B)
    # bd_ref: (1, Bp)   down-proj bias (f32)
    # wu_ref: (Bp, D)   up-proj weight
    # bu_ref: (1, D)    up-proj bias (f32)
    x = x_ref[...]

    # Down projection -> bottleneck: native-dtype operands, f32 accumulation.
    h = jnp.dot(x, wd_ref[...], preferred_element_type=jnp.float32)
    h = _gelu_tanh(h + bd_ref[...])          # (1, Bp) broadcasts over rows

    # Up projection back to hidden size (operands in weight dtype, f32 acc).
    y = jnp.dot(h.astype(wu_ref.dtype), wu_ref[...],
                preferred_element_type=jnp.float32)
    y = y + bu_ref[...]                      # (1, D) broadcasts over rows

    # Residual add in the native activation dtype (no f32 tile copy).
    o_ref[...] = x + y.astype(o_ref.dtype)


def _round_up(v: int, m: int) -> int:
    return ((v + m - 1) // m) * m


def _vmem_capacity_bytes() -> int:
    """Physical VMEM per TensorCore; conservative default if undetectable."""
    try:
        info = pltpu.get_tpu_info()
        cap = int(getattr(info, "vmem_capacity_bytes", 0))
        if cap > 0:
            return cap
    except Exception:
        pass
    return 64 * _MIB          # assume v7x-sized VMEM when unsure


def _choose_row_tile(M: int, D: int, act_bytes: int, vmem_capacity: int) -> int:
    """Row tile: big blocks to amortize ~0.35us/step; >=2 steps for megacore."""
    if M <= 8:
        return M
    # 128-MiB-VMEM chips (v5e/v6e): ~8 MiB of x per block; 64-MiB (v7x): ~4 MiB.
    target_bytes = 8 * _MIB if vmem_capacity >= 96 * _MIB else 4 * _MIB
    tm = min(M, max(8, target_bytes // max(1, D * act_bytes)))
    # Keep >= 2 grid steps so the "parallel" row axis splits across both
    # TensorCores on v7x (one extra ~0.35us step is harmless on v5e/v6e).
    if M >= 16:
        tm = min(tm, _round_up((M + 1) // 2, 8))
    return max(8, (tm // 8) * 8)


def _vmem_limit_bytes(tm, D, Bp, act_bytes, w_bytes, weight_bufs, capacity):
    """Budget derived from actual buffers + headroom, capped below physical."""
    x_tile = tm * D * act_bytes
    weights = 2 * D * Bp * w_bytes + (Bp + D) * 4      # weights + f32 biases
    need = 4 * x_tile                                  # x + out, double-buffered
    need += weight_bufs * weights                      # resident weights/biases
    need += tm * (Bp + D) * 4                          # f32 intermediates (h, y)
    limit = int(need * 1.25) + 8 * _MIB                # compiler scratch headroom
    cap = capacity - 16 * _MIB                         # never request all of VMEM
    return max(16 * _MIB, min(limit, cap))


def bottleneck_adapter_forward(x: jax.Array,
                               w_down: jax.Array, b_down: jax.Array,
                               w_up: jax.Array, b_up: jax.Array) -> jax.Array:
    """Fused adapter forward.  x: (..., D); w_down: (D,B); w_up: (B,D)."""
    orig_shape = x.shape
    D = orig_shape[-1]
    B = w_down.shape[1]
    assert w_down.shape == (D, B) and w_up.shape == (B, D)

    x2d = x.reshape(-1, D)
    M = x2d.shape[0]

    # Zero-pad the bottleneck dim to a lane-full multiple of 128 (exact:
    # zero bias -> gelu(0)=0, zero w_up rows -> zero contribution).
    Bp = max(128, _round_up(B, 128))
    if Bp != B:
        w_down = jnp.pad(w_down, ((0, 0), (0, Bp - B)))
        b_down = jnp.pad(b_down, (0, Bp - B))
        w_up = jnp.pad(w_up, ((0, Bp - B), (0, 0)))
    bd2d = b_down.reshape(1, Bp).astype(jnp.float32)
    bu2d = b_up.reshape(1, D).astype(jnp.float32)

    act_bytes = jnp.dtype(x.dtype).itemsize
    w_bytes = jnp.dtype(w_down.dtype).itemsize
    capacity = _vmem_capacity_bytes()
    tm = _choose_row_tile(M, D, act_bytes, capacity)
    grid = (pl.cdiv(M, tm),)

    # TODO(synk): for very large D*Bp (resident weights approaching the VMEM
    # budget, e.g. D=8192/B=512 f32 on v7x) switch to a D-tiled k-loop variant
    # that streams the weights instead of keeping both matrices resident.

    flops = 4 * M * D * Bp + 2 * M * D
    bytes_accessed = (2 * M * D * act_bytes
                      + 2 * D * Bp * w_bytes
                      + (Bp + D) * 4)

    def _call(single_buffer_weights: bool):
        weight_bufs = 1 if single_buffer_weights else 2

        def const_spec(shape):
            # Block-invariant operand: stays resident across grid steps.
            if single_buffer_weights:
                return pl.BlockSpec(shape, lambda i: (0, 0),
                                    pipeline_mode=pl.Buffered(1))
            return pl.BlockSpec(shape, lambda i: (0, 0))

        return pl.pallas_call(
            _adapter_kernel,
            out_shape=jax.ShapeDtypeStruct((M, D), x.dtype),
            grid_spec=pltpu.PrefetchScalarGridSpec(
                num_scalar_prefetch=0,
                grid=grid,
                in_specs=[
                    pl.BlockSpec((tm, D), lambda i: (i, 0)),   # x row tile
                    const_spec((D, Bp)),                       # w_down
                    const_spec((1, Bp)),                       # b_down
                    const_spec((Bp, D)),                       # w_up
                    const_spec((1, D)),                        # b_up
                ],
                out_specs=pl.BlockSpec((tm, D), lambda i: (i, 0)),
            ),
            compiler_params=pltpu.CompilerParams(
                dimension_semantics=("parallel",),
                vmem_limit_bytes=_vmem_limit_bytes(
                    tm, D, Bp, act_bytes, w_bytes, weight_bufs, capacity),
            ),
            cost_estimate=pl.CostEstimate(
                flops=flops,
                transcendentals=M * Bp,
                bytes_accessed=bytes_accessed,
            ),
        )(x2d, w_down, bd2d, w_up, bu2d)

    if hasattr(pl, "Buffered"):
        try:
            out2d = _call(True)
        except Exception:
            # Fallback for toolchains that reject single-buffered specs.
            out2d = _call(False)
    else:
        out2d = _call(False)

    return out2d.reshape(orig_shape)


class BottleneckAdapterLayer:
    """JAX/Pallas port of bert4torch's BottleneckAdapterLayer.

    forward(x) = x + up_proj(gelu(down_proj(x))), fused into one TPU kernel.
    Weights are stored pre-transposed as (in, out) so the kernel feeds the
    MXU without an extra transpose; bf16 weights are supported end-to-end.
    """

    def __init__(self, adapter_input_size: int, bottleneck_size: int,
                 adapter_non_linearity: str = 'gelu',
                 key: Optional[jax.Array] = None,
                 init_mean: float = 0.0, init_std: float = 0.01,
                 dtype=jnp.float32):
        assert adapter_non_linearity == 'gelu', "only gelu supported here"
        self.adapter_input_size = adapter_input_size
        self.bottleneck_size = bottleneck_size
        if key is None:
            key = jax.random.PRNGKey(0)
        k1, k2 = jax.random.split(key)
        # matches PyTorch init_weights(): N(0, 0.01) weights, zero biases
        self.w_down = (init_mean + init_std * jax.random.normal(
            k1, (adapter_input_size, bottleneck_size))).astype(dtype)
        self.b_down = jnp.zeros((bottleneck_size,), dtype=dtype)
        self.w_up = (init_mean + init_std * jax.random.normal(
            k2, (bottleneck_size, adapter_input_size))).astype(dtype)
        self.b_up = jnp.zeros((adapter_input_size,), dtype=dtype)

    def __call__(self, x):
        return self.forward(x)

    def forward(self, x):
        return bottleneck_adapter_forward(
            x, self.w_down, self.b_down, self.w_up, self.b_up)


def _reference_forward(x, w_down, b_down, w_up, b_up):
    """Pure-JAX reference (same tanh-gelu), f32 math, cast back to x.dtype."""
    x32 = x.astype(jnp.float32)
    h = x32 @ w_down.astype(jnp.float32) + b_down.astype(jnp.float32)
    h = _gelu_tanh(h)
    y = h @ w_up.astype(jnp.float32) + b_up.astype(jnp.float32)
    return (x32 + y).astype(x.dtype)


if __name__ == "__main__":
    key = jax.random.PRNGKey(0)
    k_x, k_w = jax.random.split(key)

    # Small, TPU-friendly shapes: batch=2, seq=8, hidden=128, bottleneck=32.
    batch, seq, hidden, bottleneck = 2, 8, 128, 32
    x = jax.random.normal(k_x, (batch, seq, hidden), dtype=jnp.float32)

    # f32 path
    layer = BottleneckAdapterLayer(adapter_input_size=hidden,
                                   bottleneck_size=bottleneck, key=k_w)
    out = jax.block_until_ready(layer(x))
    ref = jax.block_until_ready(_reference_forward(
        x, layer.w_down, layer.b_down, layer.w_up, layer.b_up))
    assert out.shape == x.shape and out.dtype == x.dtype
    err = float(jnp.max(jnp.abs(out - ref)))
    assert err < 1e-4, f"f32 max abs error {err}"

    # bf16 path (native-dtype MXU operands, bf16 residual add)
    layer16 = BottleneckAdapterLayer(adapter_input_size=hidden,
                                     bottleneck_size=bottleneck, key=k_w,
                                     dtype=jnp.bfloat16)
    x16 = x.astype(jnp.bfloat16)
    out16 = jax.block_until_ready(layer16(x16))
    ref16 = _reference_forward(x16, layer16.w_down, layer16.b_down,
                               layer16.w_up, layer16.b_up)
    err16 = float(jnp.max(jnp.abs(out16.astype(jnp.float32)
                                  - ref16.astype(jnp.float32))))
    assert out16.shape == x16.shape and out16.dtype == jnp.bfloat16
    assert err16 < 5e-2, f"bf16 max abs error {err16}"

    print("KERNEL_OK")
</pallas_src>

<mosaic_0001>
module attributes {stable_mosaic.version = 11 : i64} {
  func.func @_adapter_kernel(%arg0: i32, %arg1: memref<8x128xf32, #tpu.memory_space<vmem>>, %arg2: memref<128x128xf32, #tpu.memory_space<vmem>>, %arg3: memref<1x128xf32, #tpu.memory_space<vmem>>, %arg4: memref<128x128xf32, #tpu.memory_space<vmem>>, %arg5: memref<1x128xf32, #tpu.memory_space<vmem>>, %arg6: memref<8x128xf32, #tpu.memory_space<vmem>>) attributes {dimension_semantics = [#tpu.dimension_semantics<parallel>], iteration_bounds = array<i64: 2>, scalar_prefetch = 0 : i64, scratch_operands = 0 : i64, tpu.core_type = #tpu.core_type<tc>, window_params = [{transform_indices = @transform_0, window_bounds = array<i64: 8, 128>}, {pipeline_mode = #tpu.pipeline_mode<synchronous>, transform_indices = @transform_1, window_bounds = array<i64: 128, 128>}, {pipeline_mode = #tpu.pipeline_mode<synchronous>, transform_indices = @transform_2, window_bounds = array<i64: 1, 128>}, {pipeline_mode = #tpu.pipeline_mode<synchronous>, transform_indices = @transform_3, window_bounds = array<i64: 128, 128>}, {pipeline_mode = #tpu.pipeline_mode<synchronous>, transform_indices = @transform_4, window_bounds = array<i64: 1, 128>}, {transform_indices = @transform_5, window_bounds = array<i64: 8, 128>}]} {
    %c0 = arith.constant 0 : index
    %c0_0 = arith.constant 0 : index
    %0 = vector.load %arg1[%c0, %c0_0] : memref<8x128xf32, #tpu.memory_space<vmem>>, vector<8x128xf32>
    %c0_1 = arith.constant 0 : index
    %c0_2 = arith.constant 0 : index
    %1 = vector.load %arg2[%c0_1, %c0_2] : memref<128x128xf32, #tpu.memory_space<vmem>>, vector<128x128xf32>
    %cst = arith.constant dense<0.000000e+00> : vector<8x128xf32>
    %2 = tpu.matmul %0, %1, %cst {dimension_numbers = #tpu.dot_dimension_numbers<[1], [0], [0], [1], [0, 0, 1, 1], [], []>} : vector<8x128xf32>, vector<128x128xf32>, vector<8x128xf32> -> vector<8x128xf32>
    %c0_3 = arith.constant 0 : index
    %c0_4 = arith.constant 0 : index
    %3 = vector.load %arg3[%c0_3, %c0_4] : memref<1x128xf32, #tpu.memory_space<vmem>>, vector<1x128xf32>
    %4 = vector.broadcast %3 : vector<1x128xf32> to vector<8x128xf32>
    %5 = arith.addf %2, %4 : vector<8x128xf32>
    %cst_5 = arith.constant 5.000000e-01 : f32
    %6 = vector.broadcast %cst_5 : f32 to vector<8x128xf32>
    %7 = arith.mulf %6, %5 : vector<8x128xf32>
    %cst_6 = arith.constant 4.471500e-02 : f32
    %8 = vector.broadcast %cst_6 : f32 to vector<8x128xf32>
    %9 = arith.mulf %8, %5 : vector<8x128xf32>
    %10 = arith.mulf %9, %5 : vector<8x128xf32>
    %11 = arith.mulf %10, %5 : vector<8x128xf32>
    %12 = arith.addf %5, %11 : vector<8x128xf32>
    %cst_7 = arith.constant 0.797884583 : f32
    %13 = vector.broadcast %cst_7 : f32 to vector<8x128xf32>
    %14 = arith.mulf %13, %12 : vector<8x128xf32>
    %15 = math.tanh %14 : vector<8x128xf32>
    %cst_8 = arith.constant 1.000000e+00 : f32
    %16 = vector.broadcast %cst_8 : f32 to vector<8x128xf32>
    %17 = arith.addf %16, %15 : vector<8x128xf32>
    %18 = arith.mulf %7, %17 : vector<8x128xf32>
    %c0_9 = arith.constant 0 : index
    %c0_10 = arith.constant 0 : index
    %19 = vector.load %arg4[%c0_9, %c0_10] : memref<128x128xf32, #tpu.memory_space<vmem>>, vector<128x128xf32>
    %cst_11 = arith.constant dense<0.000000e+00> : vector<8x128xf32>
    %20 = tpu.matmul %18, %19, %cst_11 {dimension_numbers = #tpu.dot_dimension_numbers<[1], [0], [0], [1], [0, 0, 1, 1], [], []>} : vector<8x128xf32>, vector<128x128xf32>, vector<8x128xf32> -> vector<8x128xf32>
    %c0_12 = arith.constant 0 : index
    %c0_13 = arith.constant 0 : index
    %21 = vector.load %arg5[%c0_12, %c0_13] : memref<1x128xf32, #tpu.memory_space<vmem>>, vector<1x128xf32>
    %22 = vector.broadcast %21 : vector<1x128xf32> to vector<8x128xf32>
    %23 = arith.addf %20, %22 : vector<8x128xf32>
    %24 = arith.addf %0, %23 : vector<8x128xf32>
    %c0_14 = arith.constant 0 : index
    %c0_15 = arith.constant 0 : index
    %25 = vector.load %arg6[%c0_14, %c0_15] : memref<8x128xf32, #tpu.memory_space<vmem>>, vector<8x128xf32>
    tpu.vector_store %arg6[%c0_14, %c0_15], %24 {strides = array<i32>} : memref<8x128xf32, #tpu.memory_space<vmem>>, vector<8x128xf32>,
    return
  }
  func.func @transform_0(%arg0: i32) -> (i32, i32) {
    %c0_i32 = arith.constant 0 : i32
    %c0_i32_0 = arith.constant 0 : i32
    return %arg0, %c0_i32 : i32, i32
  }
  func.func @transform_1(%arg0: i32) -> (i32, i32) {
    %c0_i32 = arith.constant 0 : i32
    %c0_i32_0 = arith.constant 0 : i32
    %c0_i32_1 = arith.constant 0 : i32
    return %c0_i32, %c0_i32_0 : i32, i32
  }
  func.func @transform_2(%arg0: i32) -> (i32, i32) {
    %c0_i32 = arith.constant 0 : i32
    %c0_i32_0 = arith.constant 0 : i32
    %c0_i32_1 = arith.constant 0 : i32
    return %c0_i32, %c0_i32_0 : i32, i32
  }
  func.func @transform_3(%arg0: i32) -> (i32, i32) {
    %c0_i32 = arith.constant 0 : i32
    %c0_i32_0 = arith.constant 0 : i32
    %c0_i32_1 = arith.constant 0 : i32
    return %c0_i32, %c0_i32_0 : i32, i32
  }
  func.func @transform_4(%arg0: i32) -> (i32, i32) {
    %c0_i32 = arith.constant 0 : i32
    %c0_i32_0 = arith.constant 0 : i32
    %c0_i32_1 = arith.constant 0 : i32
    return %c0_i32, %c0_i32_0 : i32, i32
  }
  func.func @transform_5(%arg0: i32) -> (i32, i32) {
    %c0_i32 = arith.constant 0 : i32
    %c0_i32_0 = arith.constant 0 : i32
    return %arg0, %c0_i32 : i32, i32
  }
}

module attributes {stable_mosaic.version = 11 : i64} {
  func.func @_adapter_kernel(%arg0: i32, %arg1: memref<8x128xf32, #tpu.memory_space<vmem>>, %arg2: memref<128x128xf32, #tpu.memory_space<vmem>>, %arg3: memref<1x128xf32, #tpu.memory_space<vmem>>, %arg4: memref<128x128xf32, #tpu.memory_space<vmem>>, %arg5: memref<1x128xf32, #tpu.memory_space<vmem>>, %arg6: memref<8x128xf32, #tpu.memory_space<vmem>>) attributes {dimension_semantics = [#tpu.dimension_semantics<parallel>], iteration_bounds = array<i64: 2>, scalar_prefetch = 0 : i64, scratch_operands = 0 : i64, tpu.core_type = #tpu.core_type<tc>, window_params = [{transform_indices = @transform_0, window_bounds = array<i64: 8, 128>}, {pipeline_mode = #tpu.pipeline_mode<synchronous>, transform_indices = @transform_1, window_bounds = array<i64: 128, 128>}, {pipeline_mode = #tpu.pipeline_mode<synchronous>, transform_indices = @transform_2, window_bounds = array<i64: 1, 128>}, {pipeline_mode = #tpu.pipeline_mode<synchronous>, transform_indices = @transform_3, window_bounds = array<i64: 128, 128>}, {pipeline_mode = #tpu.pipeline_mode<synchronous>, transform_indices = @transform_4, window_bounds = array<i64: 1, 128>}, {transform_indices = @transform_5, window_bounds = array<i64: 8, 128>}]} {
    %c0 = arith.constant 0 : index
    %c0_0 = arith.constant 0 : index
    %0 = vector.load %arg1[%c0, %c0_0] : memref<8x128xf32, #tpu.memory_space<vmem>>, vector<8x128xf32>
    %c0_1 = arith.constant 0 : index
    %c0_2 = arith.constant 0 : index
    %1 = vector.load %arg2[%c0_1, %c0_2] : memref<128x128xf32, #tpu.memory_space<vmem>>, vector<128x128xf32>
    %cst = arith.constant dense<0.000000e+00> : vector<8x128xf32>
    %2 = tpu.matmul %0, %1, %cst {dimension_numbers = #tpu.dot_dimension_numbers<[1], [0], [0], [1], [0, 0, 1, 1], [], []>} : vector<8x128xf32>, vector<128x128xf32>, vector<8x128xf32> -> vector<8x128xf32>
    %c0_3 = arith.constant 0 : index
    %c0_4 = arith.constant 0 : index
    %3 = vector.load %arg3[%c0_3, %c0_4] : memref<1x128xf32, #tpu.memory_space<vmem>>, vector<1x128xf32>
    %4 = vector.broadcast %3 : vector<1x128xf32> to vector<8x128xf32>
    %5 = arith.addf %2, %4 : vector<8x128xf32>
    %cst_5 = arith.constant 5.000000e-01 : f32
    %6 = vector.broadcast %cst_5 : f32 to vector<8x128xf32>
    %7 = arith.mulf %6, %5 : vector<8x128xf32>
    %cst_6 = arith.constant 4.471500e-02 : f32
    %8 = vector.broadcast %cst_6 : f32 to vector<8x128xf32>
    %9 = arith.mulf %8, %5 : vector<8x128xf32>
    %10 = arith.mulf %9, %5 : vector<8x128xf32>
    %11 = arith.mulf %10, %5 : vector<8x128xf32>
    %12 = arith.addf %5, %11 : vector<8x128xf32>
    %cst_7 = arith.constant 0.797884583 : f32
    %13 = vector.broadcast %cst_7 : f32 to vector<8x128xf32>
    %14 = arith.mulf %13, %12 : vector<8x128xf32>
    %15 = math.tanh %14 : vector<8x128xf32>
    %cst_8 = arith.constant 1.000000e+00 : f32
    %16 = vector.broadcast %cst_8 : f32 to vector<8x128xf32>
    %17 = arith.addf %16, %15 : vector<8x128xf32>
    %18 = arith.mulf %7, %17 : vector<8x128xf32>
    %c0_9 = arith.constant 0 : index
    %c0_10 = arith.constant 0 : index
    %19 = vector.load %arg4[%c0_9, %c0_10] : memref<128x128xf32, #tpu.memory_space<vmem>>, vector<128x128xf32>
    %cst_11 = arith.constant dense<0.000000e+00> : vector<8x128xf32>
    %20 = tpu.matmul %18, %19, %cst_11 {dimension_numbers = #tpu.dot_dimension_numbers<[1], [0], [0], [1], [0, 0, 1, 1], [], []>} : vector<8x128xf32>, vector<128x128xf32>, vector<8x128xf32> -> vector<8x128xf32>
    %c0_12 = arith.constant 0 : index
    %c0_13 = arith.constant 0 : index
    %21 = vector.load %arg5[%c0_12, %c0_13] : memref<1x128xf32, #tpu.memory_space<vmem>>, vector<1x128xf32>
    %22 = vector.broadcast %21 : vector<1x128xf32> to vector<8x128xf32>
    %23 = arith.addf %20, %22 : vector<8x128xf32>
    %24 = arith.addf %0, %23 : vector<8x128xf32>
    %c0_14 = arith.constant 0 : index
    %c0_15 = arith.constant 0 : index
    %25 = vector.load %arg6[%c0_14, %c0_15] : memref<8x128xf32, #tpu.memory_space<vmem>>, vector<8x128xf32>
    tpu.vector_store %arg6[%c0_14, %c0_15], %24 {strides = array<i32>} : memref<8x128xf32, #tpu.memory_space<vmem>>, vector<8x128xf32>,
    return
  }
  func.func @transform_0(%arg0: i32) -> (i32, i32) {
    %c0_i32 = arith.constant 0 : i32
    %c0_i32_0 = arith.constant 0 : i32
    return %arg0, %c0_i32 : i32, i32
  }
  func.func @transform_1(%arg0: i32) -> (i32, i32) {
    %c0_i32 = arith.constant 0 : i32
    %c0_i32_0 = arith.constant 0 : i32
    %c0_i32_1 = arith.constant 0 : i32
    return %c0_i32, %c0_i32_0 : i32, i32
  }
  func.func @transform_2(%arg0: i32) -> (i32, i32) {
    %c0_i32 = arith.constant 0 : i32
    %c0_i32_0 = arith.constant 0 : i32
    %c0_i32_1 = arith.constant 0 : i32
    return %c0_i32, %c0_i32_0 : i32, i32
  }
  func.func @transform_3(%arg0: i32) -> (i32, i32) {
    %c0_i32 = arith.constant 0 : i32
    %c0_i32_0 = arith.constant 0 : i32
    %c0_i32_1 = arith.constant 0 : i32
    return %c0_i32, %c0_i32_0 : i32, i32
  }
  func.func @transform_4(%arg0: i32) -> (i32, i32) {
    %c0_i32 = arith.constant 0 : i32
    %c0_i32_0 = arith.constant 0 : i32
    %c0_i32_1 = arith.constant 0 : i32
    return %c0_i32, %c0_i32_0 : i32, i32
  }
  func.func @transform_5(%arg0: i32) -> (i32, i32) {
    %c0_i32 = arith.constant 0 : i32
    %c0_i32_0 = arith.constant 0 : i32
    return %arg0, %c0_i32 : i32, i32
  }
}

</mosaic_0001>

<bundles_post_ra>
// kernel: tpu_custom_call.1
= control target key start
LH: loop header
LB: loop body
LE: loop exit
PB: predicated region body
PF: predicated region fallthrough
CT: control target
= control target key end

     0   :  { %10 = vsyncpa [#allocation3], 0  ;;  %s1169_s0 = inlined_call_operand.hbm [shape: f32[16,128], index: 0, kind: input, shape index: {}]   ;;  %s1170_s1 = inlined_call_operand.hbm [shape: f32[128,128], index: 1, kind: input, shape index: {}]   ;;  %s1171_s2 = inlined_call_operand.vmem [shape: f32[1,128], index: 2, kind: input, shape index: {}]   ;;  %s1172_s3 = inlined_call_operand.hbm [shape: f32[128,128], index: 3, kind: input, shape index: {}]   ;;  %s1173_s4 = inlined_call_operand.vmem [shape: f32[1,128], index: 4, kind: input, shape index: {}]   ;;  %s1174_s5 = inlined_call_operand.hbm [shape: f32[16,128], index: 5, kind: output, shape index: {}]  }
   0x1   :  { %12 = vsyncpa [#allocation3 + $0x1], 0 }
   0x2   :  { %13 = vsyncpa [#allocation6], 0 }
   0x3   :  { %14 = vsyncpa [#allocation4], 0 }
   0x4   :  { %16 = vsyncpa [#allocation4 + $0x1], 0  ;;  %s953_s18 = smov 0   ;;  %s955_s19 = smov 0  }
   0x5   :  { %s957_s20 = smov 0   ;;  %s959_s21 = smov 0  }
   0x6 LB: > { %s974_s22 = sadd.s32 4294967295, %s913_s21   ;;  %s570_s23 = sadd.s32 4294967294, %s913_s21   ;;  %s913_s21 = sphi %s959_s21, %s1196_s21   ;;  %s909_s20 = sphi %s957_s20, %s1195_s20   ;;  %s905_s19 = sphi %s955_s19, %s1194_s19   ;;  %s901_s18 = sphi %s953_s18, %s1193_s18  }
   0x7   : > { %p42_p0 = scmp.ne.s32.totalorder %s905_s19, %s901_s18  ;;  %p1175_p1 = scmp.eq.s32.totalorder %s974_s22, 0 }
   0x8   : > { %p156_p3 = scmp.eq.s32.totalorder %s570_s23, 1  ;;  %p571_p5 = scmp.ge.s32.totalorder %s913_s21, 1 }
   0x9   : > { %p983_p4 = por %p1175_p1, %p42_p0  ;;  %p163_p7 = scmp.lt.s32.totalorder %s913_s21, 3 }
   0xa   : > { %p988_p6 = por %p156_p3, %p42_p0  ;;  %s915_s27 = smov [#allocation5]  }
   0xb   : > { %s1179_s24 = scalar_select %p983_p4, 1, 0 }
   0xc   : > { %s1180_s25 = scalar_select %p988_p6, 1, 0 }
   0xd   : > { %p993_p8 = pnand %p571_p5, %p163_p7  ;;  %s175_s28 = sshll.u32 %s915_s27, 4  ;;  %s176_s28 = int_to_ptr.vmem [resolvable:$true] %s175_s28 }
   0xe   : > { %s916_s30 = smov [#allocation7]   ;;  %s776_s7 = scalar_lea.vmem %s176_s28, 2048 }
   0xf   : > { %s1181_s26 = scalar_select %p993_p8, 1, 0 }
  0x10   : > { %p704_p9 = pneg %p993_p8  ;;  %s191_s6 = sshll.u32 %s916_s30, 4  ;;  %s192_s6 = int_to_ptr.vmem [resolvable:$true] %s191_s6 }
  0x11   : > { %p777_p13 = scmp.ne.s32.totalorder %s176_s28, %s776_s7  ;;  %p784_p5 = scmp.lt.s32.totalorder %s176_s28, %s176_s28 }
  0x12   : > { %p1002_p11 = pnand %p704_p9, %p1175_p1  ;;  %p785_p7 = scmp.lt.s32.totalorder %s776_s7, %s776_s7 }
  0x14   : > { %p767_p12 = pneg %p1002_p11  ;;  %p786_p10 = por %p785_p7, %p784_p5 }
  0x16   : > { %p779_p0 = pnand %p777_p13, %p767_p12 }
  0x18   : > { %p780_p3 = pneg %p779_p0 }
  0x1a   : > { %p787_p9 = pnand %p786_p10, %p780_p3 }
  0x1c   : > { %790 = shalt.err (!%p787_p9)
}
  0x1d   : > { %s917_s8 = smov 128   ;;  %s918_s9 = smov 8  }
  0x1e   : > { %707 = dma.hbm_to_vmem [thread:$0]  (!%p1002_p11), %s1170_s1, 2048, %s176_s28, [#allocation6], %s917_s8, %s917_s8, %s918_s9  }
  0x1f   : > { %s802_s12 = scalar_lea.vmem %s192_s6, 2048  ;;  %p810_p2 = scmp.lt.s32.totalorder %s192_s6, %s192_s6 }
  0x20   : > { %p803_p1 = scmp.ne.s32.totalorder %s192_s6, %s802_s12  ;;  %p811_p6 = scmp.lt.s32.totalorder %s802_s12, %s802_s12 }
  0x22   : > { %p805_p13 = pnand %p803_p1, %p767_p12  ;;  %p812_p5 = por %p811_p6, %p810_p2 }
  0x24   : > { %p806_p0 = pneg %p805_p13 }
  0x26   : > { %p813_p10 = pnand %p812_p5, %p806_p0 }
  0x28   : > { %816 = shalt.err (!%p813_p10)
}
  0x29   : > { %710 = dma.hbm_to_vmem [thread:$0]  (!%p1002_p11), %s1172_s3, 2048, %s192_s6, [#allocation6], %s917_s8, %s917_s8, %s918_s9  }
  0x2a   : > { %s1025_s15 = sadd.s32 1, %s913_s21   ;;  %s29_s16 = sadd.s32 1, %s909_s20 }
  0x2b   : > { %s26_s17 = ssub.s32 %s913_s21, %s1025_s15  ;;  %p36_p1 = scmp.ne.s32.totalorder %s909_s20, %s905_s19 }
  0x2c   : > { %p27_p2 = scmp.eq.s32.totalorder %s26_s17, 0  ;;  %p37_p6 = scmp.eq.s32.totalorder %s913_s21, 0 }
  0x2d   : > { %p1183_p12 = scmp.eq.s32.totalorder %s974_s22, 1  ;;  %p721_p7 = scmp.lt.s32.totalorder %s913_s21, 2 }
  0x2e   : > { %s1041_s27 = scalar_select %p27_p2, %s909_s20, %s29_s16  }
  0x2f   : > { %p1035_p3 = por %p1183_p12, %p36_p1  ;;  %p38_p9 = por %p37_p6, %p36_p1 }
  0x30   : > { %s208_s28 = sand.u32 1, %s909_s20   ;;  %s576_s30 = sshll.u32 %s913_s21, 7 }
  0x31   : > { %s1184_s23 = scalar_select %p1035_p3, 1, 0 }
  0x32   : > { %s575_s29 = sshll.u32 %s208_s28, 3  ;;  %s1048_s8 = scalar_lea.hbm %s1169_s0, %s576_s30 }
  0x33   : > { %s212_s9 = scalar_lea.vmem [#allocation2], %s575_s29  ;;  %p1050_p11 = pnand %p721_p7, %p38_p9 }
  0x34   : > { %s219_s10 = sshll.u32 %s212_s9, 4  ;;  %s209_s12 = scalar_lea.sflag [#allocation3], %s208_s28  ;;  %s220_s10 = int_to_ptr.vmem [resolvable:$true] %s219_s10 }
  0x35   : > { %s817_s13 = scalar_lea.hbm %s1048_s8, 128  ;;  %p819_p0 = pneg %p1050_p11 }
  0x36   : > { %p818_p13 = scmp.ne.s32.totalorder %s1048_s8, %s817_s13  ;;  %s822_s17 = scalar_lea.hbm %s1169_s0, 256 }
  0x37   : > { %p823_p1 = scmp.lt.s32.totalorder %s1048_s8, %s1169_s0  ;;  %p824_p2 = scmp.lt.s32.totalorder %s822_s17, %s817_s13 }
  0x38   : > { %p820_p5 = pnand %p819_p0, %p818_p13 }
  0x39   : > { %p825_p6 = por %p824_p2, %p823_p1 }
  0x3a   : > { %p821_p10 = pneg %p820_p5 }
  0x3c   : > { %p826_p12 = pnand %p825_p6, %p821_p10 }
  0x3e   : > { %829 = shalt.err (!%p826_p12)
}
  0x3f   : > { %s830_s6 = scalar_lea.vmem %s220_s10, 128  ;;  %s919_s28 = smov [#allocation2]  }
  0x40   : > { %p831_p7 = scmp.ne.s32.totalorder %s220_s10, %s830_s6  ;;  %s835_s7 = sshll.u32 %s919_s28, 4  ;;  %s836_s7 = int_to_ptr.vmem [resolvable:$false] %s835_s7 }
  0x41   : > { %s837_s9 = scalar_lea.vmem %s836_s7, 256  ;;  %p838_p13 = scmp.lt.s32.totalorder %s220_s10, %s836_s7 }
  0x42   : > { %p833_p9 = pnand %p831_p7, %p819_p0  ;;  %p839_p5 = scmp.lt.s32.totalorder %s837_s9, %s830_s6 }
  0x44   : > { %p834_p3 = pneg %p833_p9  ;;  %p840_p4 = por %p839_p5, %p838_p13 }
  0x46   : > { %p841_p8 = pnand %p840_p4, %p834_p3 }
  0x48   : > { %844 = shalt.err (!%p841_p8)
}
  0x49   : > { %714 = dma.hbm_to_vmem [thread:$0]  (!%p1050_p11), %s1048_s8, 128, %s220_s10, %s209_s12  }
  0x4a   : > { %p1186_p10 = scmp.ne.s32.totalorder %s1181_s26, 0 }
  0x4b   : > { %s1071_s13 = sand.u32 (!%p1186_p10), 1, %s905_s19   ;;  %p1187_p4 = scmp.ne.s32.totalorder (!%p1186_p10), %s1179_s24, 0 }
  0x4c   : > { %228 = sbr.rel (%p1186_p10) target bundleno = 552 (0x228), region = 40  ;;  %s578_s14 = sshll.u32 (!%p1186_p10), %s1071_s13, 3 }
  0x4d   : > { %s231_s16 = scalar_lea.sflag (!%p1186_p10), [#allocation3], %s1071_s13  ;;  %s1077_s17 = scalar_lea.vmem (!%p1186_p10), [#allocation2], %s578_s14 }
  0x51   : > { %888 = dma.done.wait (%p1187_p4), %s231_s16, 128  }
  0x52   : > { %890 = vsyncadd (%p1187_p4), %s231_s16, 4294967168  ;;  %p1188_p8 = scmp.eq.s32.totalorder %s974_s22, 0 }
  0x54   : > { %892 = dma.done.wait (%p1188_p8), [#allocation6], 4096   ;;  %p1189_p3 = pmov %p1188_p8 }
  0x55   : > { %v920_v0 = vmov 0.0   ;;  %vm921_vm0 = vmmov 0   ;;  %v285_v1 = vld [vmem:[#allocation5 + $0x78] sm:$0xff]  ;;  %v284_v2 = vld [vmem:[#allocation5 + $0x70] sm:$0xff]  ;;  %v283_v3 = vld [vmem:[#allocation5 + $0x68] sm:$0xff]  ;;  %s585_s11 = sshll.u32 %s974_s22, 7 }
  0x56   : > { %894 = vsyncadd (%p1189_p3), [#allocation6], 4294963200  ;;  %622 = vmatprep.subr.mxu0 %v920_v0  ;;  %654 = vmatprep.mubr.msk.f32.mxu0 %vm921_vm0, %v920_v0  ;;  %v282_v4 = vld [vmem:[#allocation5 + $0x60] sm:$0xff]  ;;  %v281_v5 = vld [vmem:[#allocation5 + $0x58] sm:$0xff]  ;;  %s268_s12 = scalar_lea.vmem [#allocation8], %s578_s14  ;;  %s479_s28 = scalar_lea.hbm %s1174_s5, %s585_s11 }
  0x57   : > { %657 = vmatprep.subr.mxu1 %v920_v0  ;;  %689 = vmatprep.mubr.msk.f32.mxu1 %vm921_vm0, %v920_v0  ;;  %v280_v6 = vld [vmem:[#allocation5 + $0x50] sm:$0xff]  ;;  %v279_v7 = vld [vmem:[#allocation5 + $0x48] sm:$0xff]  ;;  %v278_v8 = vld [vmem:[#allocation5 + $0x40] sm:$0xff]  ;;  %s481_s30 = sshll.u32 %s268_s12, 4  ;;  %s468_s7 = scalar_lea.sflag [#allocation4], %s1071_s13  ;;  %s482_s30 = int_to_ptr.vmem [resolvable:$true] %s481_s30 }
  0x58   : > { %623 = vmatpush3.msra.mxu0 %v285_v1  ;;  %v277_v9 = vld [vmem:[#allocation5 + $0x38] sm:$0xff]  ;;  %v276_v10 = vld [vmem:[#allocation5 + $0x30] sm:$0xff]  ;;  %v275_v11 = vld [vmem:[#allocation5 + $0x28] sm:$0xff]  ;;  %s845_s9 = scalar_lea.vmem %s482_s30, 128  ;;  %p1190_p0 = scmp.ne.s32.totalorder %s1184_s23, 0 }
  0x59   : > { %624 = vmatprep.subr.mxu0 %v920_v0  ;;  %v274_v12 = vld [vmem:[#allocation5 + $0x20] sm:$0xff]  ;;  %v273_v13 = vld [vmem:[#allocation5 + $0x18] sm:$0xff]  ;;  %v272_v14 = vld [vmem:[#allocation5 + $0x10] sm:$0xff]  ;;  %p846_p11 = scmp.ne.s32.totalorder %s482_s30, %s845_s9  ;;  %s922_s22 = smov [#allocation8]  }
  0x5a   : > { %625 = vmatpush3.msra.mxu0 %v284_v2  ;;  %v271_v15 = vld [vmem:[#allocation5 + $0x8] sm:$0xff]  ;;  %v270_v16 = vld [vmem:[#allocation5] sm:$0xff]  ;;  %v1106_v17 = vld [vmem:[%s1077_s17] sm:$0xff]  ;;  %s849_s16 = sshll.u32 %s922_s22, 4  ;;  %s850_s16 = int_to_ptr.vmem [resolvable:$false] %s849_s16 }
  0x5b   : > { %626 = vmatprep.subr.mxu0 %v920_v0  ;;  %v387_v18 = vld [vmem:[#allocation7 + $0x78] sm:$0xff]  ;;  %v386_v19 = vld [vmem:[#allocation7 + $0x70] sm:$0xff]  ;;  %v385_v20 = vld [vmem:[#allocation7 + $0x68] sm:$0xff]  ;;  %p847_p1 = pnand %p846_p11, %p1190_p0  ;;  %s851_s14 = scalar_lea.vmem %s850_s16, 256 }
  0x5c   : > { %627 = vmatpush3.msra.mxu0 %v283_v3  ;;  %658 = vmatpush3.msra.mxu1 %v387_v18  ;;  %v384_v21 = vld [vmem:[#allocation7 + $0x60] sm:$0xff]  ;;  %v383_v22 = vld [vmem:[#allocation7 + $0x58] sm:$0xff]  ;;  %v382_v23 = vld [vmem:[#allocation7 + $0x50] sm:$0xff]  ;;  %p852_p6 = scmp.lt.s32.totalorder %s482_s30, %s850_s16  ;;  %p853_p12 = scmp.lt.s32.totalorder %s851_s14, %s845_s9 }
  0x5d   : > { %628 = vmatprep.subr.mxu0 %v920_v0  ;;  %659 = vmatprep.subr.mxu1 %v920_v0  ;;  %v381_v24 = vld [vmem:[#allocation7 + $0x48] sm:$0xff]  ;;  %v380_v25 = vld [vmem:[#allocation7 + $0x40] sm:$0xff]  ;;  %v379_v26 = vld [vmem:[#allocation7 + $0x38] sm:$0xff]  ;;  %p848_p2 = pneg %p847_p1 }
  0x5e   : > { %629 = vmatpush3.msra.mxu0 %v282_v4  ;;  %660 = vmatpush3.msra.mxu1 %v386_v19  ;;  %v378_v27 = vld [vmem:[#allocation7 + $0x30] sm:$0xff]  ;;  %v377_v28 = vld [vmem:[#allocation7 + $0x28] sm:$0xff]  ;;  %v376_v29 = vld [vmem:[#allocation7 + $0x20] sm:$0xff]  ;;  %p854_p7 = por %p853_p12, %p852_p6 }
  0x5f   : > { %630 = vmatprep.subr.mxu0 %v920_v0  ;;  %661 = vmatprep.subr.mxu1 %v920_v0  ;;  %v375_v30 = vld [vmem:[#allocation7 + $0x18] sm:$0xff]  ;;  %v374_v31 = vld [vmem:[#allocation7 + $0x10] sm:$0xff]  ;;  %v373_v32 = vld [vmem:[#allocation7 + $0x8] sm:$0xff] }
  0x60   : > { %631 = vmatpush3.msra.mxu0 %v281_v5  ;;  %662 = vmatpush3.msra.mxu1 %v385_v20  ;;  %v372_v33 = vld [vmem:[#allocation7] sm:$0xff]  ;;  %v582_v34 = vld [vmem:[%s1171_s2] ss:$0 sm:$0xff]  ;;  %p855_p9 = pnand %p854_p7, %p848_p2 }
  0x61   : > { %632 = vmatprep.subr.mxu0 %v920_v0  ;;  %663 = vmatprep.subr.mxu1 %v920_v0  ;;  %v583_v47 = vld [vmem:[%s1173_s4] ss:$0 sm:$0xff] }
  0x62   : > { %633 = vmatpush3.msra.mxu0 %v280_v6  ;;  %664 = vmatpush3.msra.mxu1 %v384_v21 }
  0x63   : > { %634 = vmatprep.subr.mxu0 %v920_v0  ;;  %665 = vmatprep.subr.mxu1 %v920_v0 }
  0x64   : > { %635 = vmatpush3.msra.mxu0 %v279_v7  ;;  %666 = vmatpush3.msra.mxu1 %v383_v22 }
  0x65   : > { %636 = vmatprep.subr.mxu0 %v920_v0  ;;  %667 = vmatprep.subr.mxu1 %v920_v0 }
  0x66   : > { %637 = vmatpush3.msra.mxu0 %v278_v8  ;;  %668 = vmatpush3.msra.mxu1 %v382_v23 }
  0x67   : > { %638 = vmatprep.subr.mxu0 %v920_v0  ;;  %669 = vmatprep.subr.mxu1 %v920_v0 }
  0x68   : > { %639 = vmatpush3.msra.mxu0 %v277_v9  ;;  %670 = vmatpush3.msra.mxu1 %v381_v24 }
  0x69   : > { %640 = vmatprep.subr.mxu0 %v920_v0  ;;  %671 = vmatprep.subr.mxu1 %v920_v0 }
  0x6a   : > { %641 = vmatpush3.msra.mxu0 %v276_v10  ;;  %672 = vmatpush3.msra.mxu1 %v380_v25 }
  0x6b   : > { %642 = vmatprep.subr.mxu0 %v920_v0  ;;  %673 = vmatprep.subr.mxu1 %v920_v0 }
  0x6c   : > { %643 = vmatpush3.msra.mxu0 %v275_v11  ;;  %674 = vmatpush3.msra.mxu1 %v379_v26 }
  0x6d   : > { %644 = vmatprep.subr.mxu0 %v920_v0  ;;  %675 = vmatprep.subr.mxu1 %v920_v0 }
  0x6e   : > { %645 = vmatpush3.msra.mxu0 %v274_v12  ;;  %676 = vmatpush3.msra.mxu1 %v378_v27 }
  0x6f   : > { %646 = vmatprep.subr.mxu0 %v920_v0  ;;  %677 = vmatprep.subr.mxu1 %v920_v0 }
  0x70   : > { %647 = vmatpush3.msra.mxu0 %v273_v13  ;;  %678 = vmatpush3.msra.mxu1 %v377_v28 }
  0x71   : > { %648 = vmatprep.subr.mxu0 %v920_v0  ;;  %679 = vmatprep.subr.mxu1 %v920_v0 }
  0x72   : > { %649 = vmatpush3.msra.mxu0 %v272_v14  ;;  %680 = vmatpush3.msra.mxu1 %v376_v29 }
  0x73   : > { %650 = vmatprep.subr.mxu0 %v920_v0  ;;  %681 = vmatprep.subr.mxu1 %v920_v0 }
  0x74   : > { %651 = vmatpush3.msra.mxu0 %v271_v15  ;;  %682 = vmatpush3.msra.mxu1 %v375_v30 }
  0x75   : > { %652 = vmatprep.subr.mxu0 %v920_v0  ;;  %683 = vmatprep.subr.mxu1 %v920_v0 }
  0x76   : > { %653 = vmatpush3.msra.mxu0 %v270_v16  ;;  %684 = vmatpush3.msra.mxu1 %v374_v31 }
  0x77   : > { %655 = vmatmul.mubr.f32.vlgmr.msra.gmra.mxu0 %v1106_v17  ;;  %685 = vmatprep.subr.mxu1 %v920_v0 }
  0x78   : > { %686 = vmatpush3.msra.mxu1 %v373_v32 }
  0x79   : > { %687 = vmatprep.subr.mxu1 %v920_v0 }
  0x7a   : > { %688 = vmatpush3.msra.mxu1 %v372_v33 }
 0x137   : > { %v359_v35 = vpop.f32.mrf.mxu0 }
 0x138   : > { %v360_v36 = vadd.f32 %v582_v34, %v359_v35 }
 0x139   : > { %v656_v37 = vpop.f32.mrf.mxu0 }
 0x13a   : > { %v364_v38 = vmul.f32 0.044715, %v360_v36  ;;  %v363_v44 = vmul.f32 0.5, %v360_v36 }
 0x13c   : > { %v365_v39 = vmul.f32 %v364_v38, %v360_v36 }
 0x13e   : > { %v366_v40 = vmul.f32 %v365_v39, %v360_v36 }
 0x140   : > { %v367_v41 = vadd.f32 %v366_v40, %v360_v36 }
 0x142   : > { %v368_v42 = vmul.f32 0.7978846, %v367_v41 }
 0x144   : > { %763 = vtanh.f32 %v368_v42 }
 0x151   : > { %v764_v43 = vpop.eup %763 }
 0x152   : > { %v370_v45 = vadd.f32 1.0, %v764_v43 }
 0x154   : > { %v371_v46 = vmul.f32 %v370_v45, %v363_v44 }
 0x156   : > { %690 = vmatmul.mubr.f32.vlgmr.msra.gmra.mxu1 %v371_v46 }
 0x216   : > { %v461_v48 = vpop.f32.mrf.mxu1 }
 0x217   : > { %v462_v49 = vadd.f32 %v583_v47, %v461_v48 }
 0x218   : > { %v691_v50 = vpop.f32.mrf.mxu1 }
 0x219   : > { %v465_v51 = vadd.f32 %v462_v49, %v1106_v17 }
 0x21b   : > { %466 = vst [vmem:[%s268_s12] sm:$0xff] %v465_v51 }
 0x21c   : > { %858 = shalt.err (!%p855_p9)
}
 0x21d   : > { %s859_s17 = scalar_lea.hbm %s479_s28, 128  ;;  %s863_s26 = scalar_lea.hbm %s1174_s5, 256 }
 0x21e   : > { %p860_p13 = scmp.ne.s32.totalorder %s479_s28, %s859_s17  ;;  %p864_p4 = scmp.lt.s32.totalorder %s479_s28, %s1174_s5 }
 0x21f   : > { %p865_p8 = scmp.lt.s32.totalorder %s863_s26, %s859_s17 }
 0x220   : > { %p861_p5 = pnand %p860_p13, %p1190_p0 }
 0x221   : > { %p866_p3 = por %p865_p8, %p864_p4 }
 0x222   : > { %p862_p10 = pneg %p861_p5 }
 0x224   : > { %p867_p11 = pnand %p866_p3, %p862_p10 }
 0x226   : > { %870 = shalt.err (!%p867_p11)
}
 0x227   : > { %702 = dma.vmem_to_hbm [thread:$0]  (%p1190_p0), %s482_s30, 128, %s479_s28, %s468_s7  }
 0x228 PF: > { %s493_s11 = sand.u32 1, %s901_s18   ;;  %p1191_p1 = scmp.ne.s32.totalorder %s1180_s25, 0 }
 0x229   : > { %p1192_p2 = scmp.ge.s32.totalorder %s913_s21, 2  ;;  %s494_s12 = scalar_lea.sflag [#allocation4], %s493_s11 }
 0x22b   : > { %p716_p6 = pnand %p1192_p2, %p1191_p1 }
 0x22d   : > { %p717_p12 = pneg %p716_p6 }
 0x22f   : > { %896 = dma.done.wait (%p717_p12), %s494_s12, 128  }
 0x230   : > { %898 = vsyncadd (%p717_p12), %s494_s12, 4294967168  ;;  %p19_p7 = scmp.ge.s32.totalorder %s1025_s15, 4   ;;  %s1193_s18 = smov %s905_s19 }
 0x231   : > { %s1194_s19 = smov %s909_s20  ;;  %s1195_s20 = smov %s1041_s27 }
 0x232   : > { %s1196_s21 = smov %s1025_s15  ;;  %21 = sbr.rel (!%p19_p7) target bundleno = 6 (0x6), region = 93 }
 0x237   :  { %499 = vsyncpa [#allocation3], 1 }
 0x238   :  { %501 = vsyncpa [#allocation3 + $0x1], 1 }
 0x239   :  { %502 = vsyncpa [#allocation6], 1 }
 0x23a   :  { %503 = vsyncpa [#allocation4], 1 }
 0x23b   :  { %505 = vsyncpa [#allocation4 + $0x1], 1 }

// kernel: tpu_custom_call.1
= control target key start
LH: loop header
LB: loop body
LE: loop exit
PB: predicated region body
PF: predicated region fallthrough
CT: control target
= control target key end

     0   :  { %10 = vsyncpa [#allocation3], 0  ;;  %s1169_s0 = inlined_call_operand.hbm [shape: f32[16,128], index: 0, kind: input, shape index: {}]   ;;  %s1170_s1 = inlined_call_operand.hbm [shape: f32[128,128], index: 1, kind: input, shape index: {}]   ;;  %s1171_s2 = inlined_call_operand.vmem [shape: f32[1,128], index: 2, kind: input, shape index: {}]   ;;  %s1172_s3 = inlined_call_operand.hbm [shape: f32[128,128], index: 3, kind: input, shape index: {}]   ;;  %s1173_s4 = inlined_call_operand.vmem [shape: f32[1,128], index: 4, kind: input, shape index: {}]   ;;  %s1174_s5 = inlined_call_operand.hbm [shape: f32[16,128], index: 5, kind: output, shape index: {}]  }
   0x1   :  { %12 = vsyncpa [#allocation3 + $0x1], 0 }
   0x2   :  { %13 = vsyncpa [#allocation6], 0 }
   0x3   :  { %14 = vsyncpa [#allocation4], 0 }
   0x4   :  { %16 = vsyncpa [#allocation4 + $0x1], 0  ;;  %s953_s18 = smov 0   ;;  %s955_s19 = smov 0  }
   0x5   :  { %s957_s20 = smov 0   ;;  %s959_s21 = smov 0  }
   0x6 LB: > { %s974_s22 = sadd.s32 4294967295, %s913_s21   ;;  %s570_s23 = sadd.s32 4294967294, %s913_s21   ;;  %s913_s21 = sphi %s959_s21, %s1196_s21   ;;  %s909_s20 = sphi %s957_s20, %s1195_s20   ;;  %s905_s19 = sphi %s955_s19, %s1194_s19   ;;  %s901_s18 = sphi %s953_s18, %s1193_s18  }
   0x7   : > { %p42_p0 = scmp.ne.s32.totalorder %s905_s19, %s901_s18  ;;  %p1175_p1 = scmp.eq.s32.totalorder %s974_s22, 0 }
   0x8   : > { %p156_p3 = scmp.eq.s32.totalorder %s570_s23, 1  ;;  %p571_p5 = scmp.ge.s32.totalorder %s913_s21, 1 }
   0x9   : > { %p983_p4 = por %p1175_p1, %p42_p0  ;;  %p163_p7 = scmp.lt.s32.totalorder %s913_s21, 3 }
   0xa   : > { %p988_p6 = por %p156_p3, %p42_p0  ;;  %s915_s27 = smov [#allocation5]  }
   0xb   : > { %s1179_s24 = scalar_select %p983_p4, 1, 0 }
   0xc   : > { %s1180_s25 = scalar_select %p988_p6, 1, 0 }
   0xd   : > { %p993_p8 = pnand %p571_p5, %p163_p7  ;;  %s175_s28 = sshll.u32 %s915_s27, 4  ;;  %s176_s28 = int_to_ptr.vmem [resolvable:$true] %s175_s28 }
   0xe   : > { %s916_s30 = smov [#allocation7]   ;;  %s776_s7 = scalar_lea.vmem %s176_s28, 2048 }
   0xf   : > { %s1181_s26 = scalar_select %p993_p8, 1, 0 }
  0x10   : > { %p704_p9 = pneg %p993_p8  ;;  %s191_s6 = sshll.u32 %s916_s30, 4  ;;  %s192_s6 = int_to_ptr.vmem [resolvable:$true] %s191_s6 }
  0x11   : > { %p777_p13 = scmp.ne.s32.totalorder %s176_s28, %s776_s7  ;;  %p784_p5 = scmp.lt.s32.totalorder %s176_s28, %s176_s28 }
  0x12   : > { %p1002_p11 = pnand %p704_p9, %p1175_p1  ;;  %p785_p7 = scmp.lt.s32.totalorder %s776_s7, %s776_s7 }
  0x14   : > { %p767_p12 = pneg %p1002_p11  ;;  %p786_p10 = por %p785_p7, %p784_p5 }
  0x16   : > { %p779_p0 = pnand %p777_p13, %p767_p12 }
  0x18   : > { %p780_p3 = pneg %p779_p0 }
  0x1a   : > { %p787_p9 = pnand %p786_p10, %p780_p3 }
  0x1c   : > { %790 = shalt.err (!%p787_p9)
}
  0x1d   : > { %s917_s8 = smov 128   ;;  %s918_s9 = smov 8  }
  0x1e   : > { %707 = dma.hbm_to_vmem [thread:$0]  (!%p1002_p11), %s1170_s1, 2048, %s176_s28, [#allocation6], %s917_s8, %s917_s8, %s918_s9  }
  0x1f   : > { %s802_s12 = scalar_lea.vmem %s192_s6, 2048  ;;  %p810_p2 = scmp.lt.s32.totalorder %s192_s6, %s192_s6 }
  0x20   : > { %p803_p1 = scmp.ne.s32.totalorder %s192_s6, %s802_s12  ;;  %p811_p6 = scmp.lt.s32.totalorder %s802_s12, %s802_s12 }
  0x22   : > { %p805_p13 = pnand %p803_p1, %p767_p12  ;;  %p812_p5 = por %p811_p6, %p810_p2 }
  0x24   : > { %p806_p0 = pneg %p805_p13 }
  0x26   : > { %p813_p10 = pnand %p812_p5, %p806_p0 }
  0x28   : > { %816 = shalt.err (!%p813_p10)
}
  0x29   : > { %710 = dma.hbm_to_vmem [thread:$0]  (!%p1002_p11), %s1172_s3, 2048, %s192_s6, [#allocation6], %s917_s8, %s917_s8, %s918_s9  }
  0x2a   : > { %s1025_s15 = sadd.s32 1, %s913_s21   ;;  %s29_s16 = sadd.s32 1, %s909_s20 }
  0x2b   : > { %s26_s17 = ssub.s32 %s913_s21, %s1025_s15  ;;  %p36_p1 = scmp.ne.s32.totalorder %s909_s20, %s905_s19 }
  0x2c   : > { %p27_p2 = scmp.eq.s32.totalorder %s26_s17, 0  ;;  %p37_p6 = scmp.eq.s32.totalorder %s913_s21, 0 }
  0x2d   : > { %p1183_p12 = scmp.eq.s32.totalorder %s974_s22, 1  ;;  %p721_p7 = scmp.lt.s32.totalorder %s913_s21, 2 }
  0x2e   : > { %s1041_s27 = scalar_select %p27_p2, %s909_s20, %s29_s16  }
  0x2f   : > { %p1035_p3 = por %p1183_p12, %p36_p1  ;;  %p38_p9 = por %p37_p6, %p36_p1 }
  0x30   : > { %s208_s28 = sand.u32 1, %s909_s20   ;;  %s576_s30 = sshll.u32 %s913_s21, 7 }
  0x31   : > { %s1184_s23 = scalar_select %p1035_p3, 1, 0 }
  0x32   : > { %s575_s29 = sshll.u32 %s208_s28, 3  ;;  %s1048_s8 = scalar_lea.hbm %s1169_s0, %s576_s30 }
  0x33   : > { %s212_s9 = scalar_lea.vmem [#allocation2], %s575_s29  ;;  %p1050_p11 = pnand %p721_p7, %p38_p9 }
  0x34   : > { %s219_s10 = sshll.u32 %s212_s9, 4  ;;  %s209_s12 = scalar_lea.sflag [#allocation3], %s208_s28  ;;  %s220_s10 = int_to_ptr.vmem [resolvable:$true] %s219_s10 }
  0x35   : > { %s817_s13 = scalar_lea.hbm %s1048_s8, 128  ;;  %p819_p0 = pneg %p1050_p11 }
  0x36   : > { %p818_p13 = scmp.ne.s32.totalorder %s1048_s8, %s817_s13  ;;  %s822_s17 = scalar_lea.hbm %s1169_s0, 256 }
  0x37   : > { %p823_p1 = scmp.lt.s32.totalorder %s1048_s8, %s1169_s0  ;;  %p824_p2 = scmp.lt.s32.totalorder %s822_s17, %s817_s13 }
  0x38   : > { %p820_p5 = pnand %p819_p0, %p818_p13 }
  0x39   : > { %p825_p6 = por %p824_p2, %p823_p1 }
  0x3a   : > { %p821_p10 = pneg %p820_p5 }
  0x3c   : > { %p826_p12 = pnand %p825_p6, %p821_p10 }
  0x3e   : > { %829 = shalt.err (!%p826_p12)
}
  0x3f   : > { %s830_s6 = scalar_lea.vmem %s220_s10, 128  ;;  %s919_s28 = smov [#allocation2]  }
  0x40   : > { %p831_p7 = scmp.ne.s32.totalorder %s220_s10, %s830_s6  ;;  %s835_s7 = sshll.u32 %s919_s28, 4  ;;  %s836_s7 = int_to_ptr.vmem [resolvable:$false] %s835_s7 }
  0x41   : > { %s837_s9 = scalar_lea.vmem %s836_s7, 256  ;;  %p838_p13 = scmp.lt.s32.totalorder %s220_s10, %s836_s7 }
  0x42   : > { %p833_p9 = pnand %p831_p7, %p819_p0  ;;  %p839_p5 = scmp.lt.s32.totalorder %s837_s9, %s830_s6 }
  0x44   : > { %p834_p3 = pneg %p833_p9  ;;  %p840_p4 = por %p839_p5, %p838_p13 }
  0x46   : > { %p841_p8 = pnand %p840_p4, %p834_p3 }
  0x48   : > { %844 = shalt.err (!%p841_p8)
}
  0x49   : > { %714 = dma.hbm_to_vmem [thread:$0]  (!%p1050_p11), %s1048_s8, 128, %s220_s10, %s209_s12  }
  0x4a   : > { %p1186_p10 = scmp.ne.s32.totalorder %s1181_s26, 0 }
  0x4b   : > { %s1071_s13 = sand.u32 (!%p1186_p10), 1, %s905_s19   ;;  %p1187_p4 = scmp.ne.s32.totalorder (!%p1186_p10), %s1179_s24, 0 }
  0x4c   : > { %228 = sbr.rel (%p1186_p10) target bundleno = 552 (0x228), region = 40  ;;  %s578_s14 = sshll.u32 (!%p1186_p10), %s1071_s13, 3 }
  0x4d   : > { %s231_s16 = scalar_lea.sflag (!%p1186_p10), [#allocation3], %s1071_s13  ;;  %s1077_s17 = scalar_lea.vmem (!%p1186_p10), [#allocation2], %s578_s14 }
  0x51   : > { %888 = dma.done.wait (%p1187_p4), %s231_s16, 128  }
  0x52   : > { %890 = vsyncadd (%p1187_p4), %s231_s16, 4294967168  ;;  %p1188_p8 = scmp.eq.s32.totalorder %s974_s22, 0 }
  0x54   : > { %892 = dma.done.wait (%p1188_p8), [#allocation6], 4096   ;;  %p1189_p3 = pmov %p1188_p8 }
  0x55   : > { %v920_v0 = vmov 0.0   ;;  %vm921_vm0 = vmmov 0   ;;  %v285_v1 = vld [vmem:[#allocation5 + $0x78] sm:$0xff]  ;;  %v284_v2 = vld [vmem:[#allocation5 + $0x70] sm:$0xff]  ;;  %v283_v3 = vld [vmem:[#allocation5 + $0x68] sm:$0xff]  ;;  %s585_s11 = sshll.u32 %s974_s22, 7 }
  0x56   : > { %894 = vsyncadd (%p1189_p3), [#allocation6], 4294963200  ;;  %622 = vmatprep.subr.mxu0 %v920_v0  ;;  %654 = vmatprep.mubr.msk.f32.mxu0 %vm921_vm0, %v920_v0  ;;  %v282_v4 = vld [vmem:[#allocation5 + $0x60] sm:$0xff]  ;;  %v281_v5 = vld [vmem:[#allocation5 + $0x58] sm:$0xff]  ;;  %s268_s12 = scalar_lea.vmem [#allocation8], %s578_s14  ;;  %s479_s28 = scalar_lea.hbm %s1174_s5, %s585_s11 }
  0x57   : > { %657 = vmatprep.subr.mxu1 %v920_v0  ;;  %689 = vmatprep.mubr.msk.f32.mxu1 %vm921_vm0, %v920_v0  ;;  %v280_v6 = vld [vmem:[#allocation5 + $0x50] sm:$0xff]  ;;  %v279_v7 = vld [vmem:[#allocation5 + $0x48] sm:$0xff]  ;;  %v278_v8 = vld [vmem:[#allocation5 + $0x40] sm:$0xff]  ;;  %s481_s30 = sshll.u32 %s268_s12, 4  ;;  %s468_s7 = scalar_lea.sflag [#allocation4], %s1071_s13  ;;  %s482_s30 = int_to_ptr.vmem [resolvable:$true] %s481_s30 }
  0x58   : > { %623 = vmatpush3.msra.mxu0 %v285_v1  ;;  %v277_v9 = vld [vmem:[#allocation5 + $0x38] sm:$0xff]  ;;  %v276_v10 = vld [vmem:[#allocation5 + $0x30] sm:$0xff]  ;;  %v275_v11 = vld [vmem:[#allocation5 + $0x28] sm:$0xff]  ;;  %s845_s9 = scalar_lea.vmem %s482_s30, 128  ;;  %p1190_p0 = scmp.ne.s32.totalorder %s1184_s23, 0 }
  0x59   : > { %624 = vmatprep.subr.mxu0 %v920_v0  ;;  %v274_v12 = vld [vmem:[#allocation5 + $0x20] sm:$0xff]  ;;  %v273_v13 = vld [vmem:[#allocation5 + $0x18] sm:$0xff]  ;;  %v272_v14 = vld [vmem:[#allocation5 + $0x10] sm:$0xff]  ;;  %p846_p11 = scmp.ne.s32.totalorder %s482_s30, %s845_s9  ;;  %s922_s22 = smov [#allocation8]  }
  0x5a   : > { %625 = vmatpush3.msra.mxu0 %v284_v2  ;;  %v271_v15 = vld [vmem:[#allocation5 + $0x8] sm:$0xff]  ;;  %v270_v16 = vld [vmem:[#allocation5] sm:$0xff]  ;;  %v1106_v17 = vld [vmem:[%s1077_s17] sm:$0xff]  ;;  %s849_s16 = sshll.u32 %s922_s22, 4  ;;  %s850_s16 = int_to_ptr.vmem [resolvable:$false] %s849_s16 }
  0x5b   : > { %626 = vmatprep.subr.mxu0 %v920_v0  ;;  %v387_v18 = vld [vmem:[#allocation7 + $0x78] sm:$0xff]  ;;  %v386_v19 = vld [vmem:[#allocation7 + $0x70] sm:$0xff]  ;;  %v385_v20 = vld [vmem:[#allocation7 + $0x68] sm:$0xff]  ;;  %p847_p1 = pnand %p846_p11, %p1190_p0  ;;  %s851_s14 = scalar_lea.vmem %s850_s16, 256 }
  0x5c   : > { %627 = vmatpush3.msra.mxu0 %v283_v3  ;;  %658 = vmatpush3.msra.mxu1 %v387_v18  ;;  %v384_v21 = vld [vmem:[#allocation7 + $0x60] sm:$0xff]  ;;  %v383_v22 = vld [vmem:[#allocation7 + $0x58] sm:$0xff]  ;;  %v382_v23 = vld [vmem:[#allocation7 + $0x50] sm:$0xff]  ;;  %p852_p6 = scmp.lt.s32.totalorder %s482_s30, %s850_s16  ;;  %p853_p12 = scmp.lt.s32.totalorder %s851_s14, %s845_s9 }
  0x5d   : > { %628 = vmatprep.subr.mxu0 %v920_v0  ;;  %659 = vmatprep.subr.mxu1 %v920_v0  ;;  %v381_v24 = vld [vmem:[#allocation7 + $0x48] sm:$0xff]  ;;  %v380_v25 = vld [vmem:[#allocation7 + $0x40] sm:$0xff]  ;;  %v379_v26 = vld [vmem:[#allocation7 + $0x38] sm:$0xff]  ;;  %p848_p2 = pneg %p847_p1 }
  0x5e   : > { %629 = vmatpush3.msra.mxu0 %v282_v4  ;;  %660 = vmatpush3.msra.mxu1 %v386_v19  ;;  %v378_v27 = vld [vmem:[#allocation7 + $0x30] sm:$0xff]  ;;  %v377_v28 = vld [vmem:[#allocation7 + $0x28] sm:$0xff]  ;;  %v376_v29 = vld [vmem:[#allocation7 + $0x20] sm:$0xff]  ;;  %p854_p7 = por %p853_p12, %p852_p6 }
  0x5f   : > { %630 = vmatprep.subr.mxu0 %v920_v0  ;;  %661 = vmatprep.subr.mxu1 %v920_v0  ;;  %v375_v30 = vld [vmem:[#allocation7 + $0x18] sm:$0xff]  ;;  %v374_v31 = vld [vmem:[#allocation7 + $0x10] sm:$0xff]  ;;  %v373_v32 = vld [vmem:[#allocation7 + $0x8] sm:$0xff] }
  0x60   : > { %631 = vmatpush3.msra.mxu0 %v281_v5  ;;  %662 = vmatpush3.msra.mxu1 %v385_v20  ;;  %v372_v33 = vld [vmem:[#allocation7] sm:$0xff]  ;;  %v582_v34 = vld [vmem:[%s1171_s2] ss:$0 sm:$0xff]  ;;  %p855_p9 = pnand %p854_p7, %p848_p2 }
  0x61   : > { %632 = vmatprep.subr.mxu0 %v920_v0  ;;  %663 = vmatprep.subr.mxu1 %v920_v0  ;;  %v583_v47 = vld [vmem:[%s1173_s4] ss:$0 sm:$0xff] }
  0x62   : > { %633 = vmatpush3.msra.mxu0 %v280_v6  ;;  %664 = vmatpush3.msra.mxu1 %v384_v21 }
  0x63   : > { %634 = vmatprep.subr.mxu0 %v920_v0  ;;  %665 = vmatprep.subr.mxu1 %v920_v0 }
  0x64   : > { %635 = vmatpush3.msra.mxu0 %v279_v7  ;;  %666 = vmatpush3.msra.mxu1 %v383_v22 }
  0x65   : > { %636 = vmatprep.subr.mxu0 %v920_v0  ;;  %667 = vmatprep.subr.mxu1 %v920_v0 }
  0x66   : > { %637 = vmatpush3.msra.mxu0 %v278_v8  ;;  %668 = vmatpush3.msra.mxu1 %v382_v23 }
  0x67   : > { %638 = vmatprep.subr.mxu0 %v920_v0  ;;  %669 = vmatprep.subr.mxu1 %v920_v0 }
  0x68   : > { %639 = vmatpush3.msra.mxu0 %v277_v9  ;;  %670 = vmatpush3.msra.mxu1 %v381_v24 }
  0x69   : > { %640 = vmatprep.subr.mxu0 %v920_v0  ;;  %671 = vmatprep.subr.mxu1 %v920_v0 }
  0x6a   : > { %641 = vmatpush3.msra.mxu0 %v276_v10  ;;  %672 = vmatpush3.msra.mxu1 %v380_v25 }
  0x6b   : > { %642 = vmatprep.subr.mxu0 %v920_v0  ;;  %673 = vmatprep.subr.mxu1 %v920_v0 }
  0x6c   : > { %643 = vmatpush3.msra.mxu0 %v275_v11  ;;  %674 = vmatpush3.msra.mxu1 %v379_v26 }
  0x6d   : > { %644 = vmatprep.subr.mxu0 %v920_v0  ;;  %675 = vmatprep.subr.mxu1 %v920_v0 }
  0x6e   : > { %645 = vmatpush3.msra.mxu0 %v274_v12  ;;  %676 = vmatpush3.msra.mxu1 %v378_v27 }
  0x6f   : > { %646 = vmatprep.subr.mxu0 %v920_v0  ;;  %677 = vmatprep.subr.mxu1 %v920_v0 }
  0x70   : > { %647 = vmatpush3.msra.mxu0 %v273_v13  ;;  %678 = vmatpush3.msra.mxu1 %v377_v28 }
  0x71   : > { %648 = vmatprep.subr.mxu0 %v920_v0  ;;  %679 = vmatprep.subr.mxu1 %v920_v0 }
  0x72   : > { %649 = vmatpush3.msra.mxu0 %v272_v14  ;;  %680 = vmatpush3.msra.mxu1 %v376_v29 }
  0x73   : > { %650 = vmatprep.subr.mxu0 %v920_v0  ;;  %681 = vmatprep.subr.mxu1 %v920_v0 }
  0x74   : > { %651 = vmatpush3.msra.mxu0 %v271_v15  ;;  %682 = vmatpush3.msra.mxu1 %v375_v30 }
  0x75   : > { %652 = vmatprep.subr.mxu0 %v920_v0  ;;  %683 = vmatprep.subr.mxu1 %v920_v0 }
  0x76   : > { %653 = vmatpush3.msra.mxu0 %v270_v16  ;;  %684 = vmatpush3.msra.mxu1 %v374_v31 }
  0x77   : > { %655 = vmatmul.mubr.f32.vlgmr.msra.gmra.mxu0 %v1106_v17  ;;  %685 = vmatprep.subr.mxu1 %v920_v0 }
  0x78   : > { %686 = vmatpush3.msra.mxu1 %v373_v32 }
  0x79   : > { %687 = vmatprep.subr.mxu1 %v920_v0 }
  0x7a   : > { %688 = vmatpush3.msra.mxu1 %v372_v33 }
 0x137   : > { %v359_v35 = vpop.f32.mrf.mxu0 }
 0x138   : > { %v360_v36 = vadd.f32 %v582_v34, %v359_v35 }
 0x139   : > { %v656_v37 = vpop.f32.mrf.mxu0 }
 0x13a   : > { %v364_v38 = vmul.f32 0.044715, %v360_v36  ;;  %v363_v44 = vmul.f32 0.5, %v360_v36 }
 0x13c   : > { %v365_v39 = vmul.f32 %v364_v38, %v360_v36 }
 0x13e   : > { %v366_v40 = vmul.f32 %v365_v39, %v360_v36 }
 0x140   : > { %v367_v41 = vadd.f32 %v366_v40, %v360_v36 }
 0x142   : > { %v368_v42 = vmul.f32 0.7978846, %v367_v41 }
 0x144   : > { %763 = vtanh.f32 %v368_v42 }
 0x151   : > { %v764_v43 = vpop.eup %763 }
 0x152   : > { %v370_v45 = vadd.f32 1.0, %v764_v43 }
 0x154   : > { %v371_v46 = vmul.f32 %v370_v45, %v363_v44 }
 0x156   : > { %690 = vmatmul.mubr.f32.vlgmr.msra.gmra.mxu1 %v371_v46 }
 0x216   : > { %v461_v48 = vpop.f32.mrf.mxu1 }
 0x217   : > { %v462_v49 = vadd.f32 %v583_v47, %v461_v48 }
 0x218   : > { %v691_v50 = vpop.f32.mrf.mxu1 }
 0x219   : > { %v465_v51 = vadd.f32 %v462_v49, %v1106_v17 }
 0x21b   : > { %466 = vst [vmem:[%s268_s12] sm:$0xff] %v465_v51 }
 0x21c   : > { %858 = shalt.err (!%p855_p9)
}
 0x21d   : > { %s859_s17 = scalar_lea.hbm %s479_s28, 128  ;;  %s863_s26 = scalar_lea.hbm %s1174_s5, 256 }
 0x21e   : > { %p860_p13 = scmp.ne.s32.totalorder %s479_s28, %s859_s17  ;;  %p864_p4 = scmp.lt.s32.totalorder %s479_s28, %s1174_s5 }
 0x21f   : > { %p865_p8 = scmp.lt.s32.totalorder %s863_s26, %s859_s17 }
 0x220   : > { %p861_p5 = pnand %p860_p13, %p1190_p0 }
 0x221   : > { %p866_p3 = por %p865_p8, %p864_p4 }
 0x222   : > { %p862_p10 = pneg %p861_p5 }
 0x224   : > { %p867_p11 = pnand %p866_p3, %p862_p10 }
 0x226   : > { %870 = shalt.err (!%p867_p11)
}
 0x227   : > { %702 = dma.vmem_to_hbm [thread:$0]  (%p1190_p0), %s482_s30, 128, %s479_s28, %s468_s7  }
 0x228 PF: > { %s493_s11 = sand.u32 1, %s901_s18   ;;  %p1191_p1 = scmp.ne.s32.totalorder %s1180_s25, 0 }
 0x229   : > { %p1192_p2 = scmp.ge.s32.totalorder %s913_s21, 2  ;;  %s494_s12 = scalar_lea.sflag [#allocation4], %s493_s11 }
 0x22b   : > { %p716_p6 = pnand %p1192_p2, %p1191_p1 }
 0x22d   : > { %p717_p12 = pneg %p716_p6 }
 0x22f   : > { %896 = dma.done.wait (%p717_p12), %s494_s12, 128  }
 0x230   : > { %898 = vsyncadd (%p717_p12), %s494_s12, 4294967168  ;;  %p19_p7 = scmp.ge.s32.totalorder %s1025_s15, 4   ;;  %s1193_s18 = smov %s905_s19 }
 0x231   : > { %s1194_s19 = smov %s909_s20  ;;  %s1195_s20 = smov %s1041_s27 }
 0x232   : > { %s1196_s21 = smov %s1025_s15  ;;  %21 = sbr.rel (!%p19_p7) target bundleno = 6 (0x6), region = 93 }
 0x237   :  { %499 = vsyncpa [#allocation3], 1 }
 0x238   :  { %501 = vsyncpa [#allocation3 + $0x1], 1 }
 0x239   :  { %502 = vsyncpa [#allocation6], 1 }
 0x23a   :  { %503 = vsyncpa [#allocation4], 1 }
 0x23b   :  { %505 = vsyncpa [#allocation4 + $0x1], 1 }

</bundles_post_ra>
